<compile_context>
chip_gen: v7x
topology: tpu7x:2x2x1
jax: 0.10.0
libtpu: 0.0.40
codegen_flags: <defaults>
</compile_context>

<pallas_src>
import functools

import numpy as np
import jax
import jax.numpy as jnp
from jax.experimental import pallas as pl
from jax.experimental.pallas import tpu as pltpu

_SUBLANE = 8
# Michelot converges once the candidate support stabilizes (typically <= 5 steps for
# realistic data); extra iterations past convergence are exact no-ops.
_N_FIXED_POINT = 10


def _round_up(v, m):
    return ((v + m - 1) // m) * m


def _pick_tile_r(num_rows, d):
    """Row tile: multiple of 8, <= 512, ~16 MiB f32 working set (~6 live tiles:
    double-buffered in/out blocks + temps), with an even grid-step count >= 2 so
    both v7x TensorCores stay busy (free on 1-TC chips)."""
    if num_rows <= _SUBLANE:
        return num_rows  # single partial block; block dim == full array dim is legal
    budget_rows = (16 * 1024 * 1024) // (4 * 6 * max(d, 1))
    tile = max(_SUBLANE, min(512, (budget_rows // _SUBLANE) * _SUBLANE))
    steps = pl.cdiv(num_rows, tile)
    steps = max(2, steps + (steps % 2))  # round step count up to an even number
    tile = min(tile, _round_up(pl.cdiv(num_rows, steps), _SUBLANE))
    return max(_SUBLANE, tile)


def _log_sparsemax_kernel(x_ref, o_ref, *, n_iter):
    d = x_ref.shape[-1]

    # Seed: analytic lower bounds for tau (no shifted copy of x is materialized).
    #   (sum(x) - 1) / D <= tau   and   rowmax - 1 <= tau  (since f(t)=sum(relu(x-t))
    #   is decreasing with f(tau)=1).
    x0 = x_ref[...].astype(jnp.float32)                       # (tile_r, D)
    rowsum = jnp.sum(x0, axis=-1, keepdims=True)
    rowmax = jnp.max(x0, axis=-1, keepdims=True)
    t0 = jnp.maximum((rowsum - 1.0) / d, rowmax - 1.0)

    # Michelot fixed point:  t <- (sum_{x>t} x - 1) / |{x > t}|.
    # From a lower bound the iterate is nondecreasing and bounded above by tau;
    # once {x > t} equals the true support the iterate is exactly the sort-based
    # tau and stays fixed, so ties at the threshold are handled exactly.
    def body(_, t):
        xx = x_ref[...].astype(jnp.float32)                   # re-read resident block
        in_supp = xx > t
        cnt = jnp.sum(in_supp.astype(jnp.float32), axis=-1, keepdims=True)
        ssum = jnp.sum(jnp.where(in_supp, xx, 0.0), axis=-1, keepdims=True)
        return (ssum - 1.0) / cnt

    tau = jax.lax.fori_loop(0, n_iter, body, t0, unroll=False)

    p = jnp.maximum(x_ref[...].astype(jnp.float32) - tau, 0.0)  # sparsemax probs
    o_ref[...] = jnp.log(p).astype(o_ref.dtype)                 # log(0) = -inf, as torch


def log_sparsemax_topk(x, dim=-1, k=100):
    """JAX wrapper reproducing LogSparsemaxTopK(dim, k).forward(x)."""
    # `k` only changes the torch search strategy (doubling recursion / full-sort
    # fallback); the result is always the exact full sparsemax, computed directly here.
    del k
    x = jnp.asarray(x)
    xt = jnp.moveaxis(x, dim, -1)
    lead_shape = xt.shape[:-1]
    D = xt.shape[-1]
    R = int(np.prod(lead_shape)) if lead_shape else 1
    x2 = xt.reshape(R, D)

    tile_r = _pick_tile_r(R, D)
    grid = (pl.cdiv(R, tile_r),)  # partial tail block: row-independent, writes masked

    out2 = pl.pallas_call(
        functools.partial(_log_sparsemax_kernel, n_iter=_N_FIXED_POINT),
        out_shape=jax.ShapeDtypeStruct((R, D), x.dtype),
        grid=grid,
        # Last block dim == full D (legal even when D % 128 != 0): no pad / slice.
        in_specs=[pl.BlockSpec((tile_r, D), lambda i: (i, 0))],
        out_specs=pl.BlockSpec((tile_r, D), lambda i: (i, 0)),
        compiler_params=pltpu.CompilerParams(
            dimension_semantics=("parallel",),
            vmem_limit_bytes=32 * 1024 * 1024,  # safe on v7x's 64 MiB VMEM per TC
        ),
    )(x2)

    out = out2.reshape(lead_shape + (D,))
    return jnp.moveaxis(out, -1, dim)


def _reference_log_sparsemax(x, dim=-1):
    """Pure-JAX sort-based reference mirroring the torch code."""
    x = jnp.asarray(x, jnp.float32)
    x = x - jnp.max(x, axis=dim, keepdims=True)
    srt = -jnp.sort(-x, axis=dim)
    csum = jnp.cumsum(srt, axis=dim) - 1.0
    d = x.shape[dim]
    shape = [1] * x.ndim
    shape[dim] = d
    rhos = jnp.arange(1, d + 1, dtype=x.dtype).reshape(shape)
    support = rhos * srt > csum
    supp_size = jnp.sum(support, axis=dim, keepdims=True)
    tau = jnp.take_along_axis(csum, supp_size - 1, axis=dim) / supp_size.astype(x.dtype)
    return jnp.log(jnp.clip(x - tau, 0.0, None))


if __name__ == "__main__":
    key = jax.random.PRNGKey(0)
    # small example: batch=2, seq=8, hidden=32; sparsemax over the hidden axis
    x = jax.random.normal(key, (2, 8, 32), dtype=jnp.float32)

    dim, k = -1, 100  # module params (k >= 100 > 32 -> torch takes the full-sort path too)
    out = log_sparsemax_topk(x, dim=dim, k=k)
    out = jax.block_until_ready(out)

    ref = _reference_log_sparsemax(x, dim=dim)
    assert out.shape == x.shape and out.dtype == x.dtype
    # -inf entries (zero probability) must match exactly; finite entries to f32 tolerance
    assert bool(jnp.all(jnp.isneginf(out) == jnp.isneginf(ref)))
    finite = jnp.isfinite(ref)
    assert bool(jnp.allclose(jnp.where(finite, out, 0.0),
                             jnp.where(finite, ref, 0.0),
                             atol=1e-4, rtol=1e-5))
    print("KERNEL_OK")
</pallas_src>

<mosaic_0001>
module attributes {stable_mosaic.version = 11 : i64} {
  func.func @_log_sparsemax_kernel(%arg0: i32, %arg1: memref<8x32xf32, #tpu.memory_space<vmem>>, %arg2: memref<8x32xf32, #tpu.memory_space<vmem>>) attributes {dimension_semantics = [#tpu.dimension_semantics<parallel>], iteration_bounds = array<i64: 2>, scalar_prefetch = 0 : i64, scratch_operands = 0 : i64, tpu.core_type = #tpu.core_type<tc>, window_params = [{transform_indices = @transform_0, window_bounds = array<i64: 8, 32>}, {transform_indices = @transform_1, window_bounds = array<i64: 8, 32>}]} {
    %c0 = arith.constant 0 : index
    %c0_0 = arith.constant 0 : index
    %0 = vector.load %arg1[%c0, %c0_0] : memref<8x32xf32, #tpu.memory_space<vmem>>, vector<8x32xf32>
    %cst = arith.constant dense<0.000000e+00> : vector<8xf32>
    %1 = vector.multi_reduction <add>, %0, %cst [1] : vector<8x32xf32> to vector<8xf32>
    %2 = vector.shape_cast %1 : vector<8xf32> to vector<8x1xf32>
    %cst_1 = arith.constant dense<0xFF800000> : vector<8xf32>
    %3 = vector.multi_reduction <maximumf>, %0, %cst_1 [1] : vector<8x32xf32> to vector<8xf32>
    %4 = vector.shape_cast %3 : vector<8xf32> to vector<8x1xf32>
    %cst_2 = arith.constant 1.000000e+00 : f32
    %5 = vector.broadcast %cst_2 : f32 to vector<8x1xf32>
    %6 = arith.subf %2, %5 : vector<8x1xf32>
    %cst_3 = arith.constant 3.200000e+01 : f32
    %7 = vector.broadcast %cst_3 : f32 to vector<8x1xf32>
    %8 = arith.divf %6, %7 : vector<8x1xf32>
    %cst_4 = arith.constant 1.000000e+00 : f32
    %9 = vector.broadcast %cst_4 : f32 to vector<8x1xf32>
    %10 = arith.subf %4, %9 : vector<8x1xf32>
    %11 = arith.maximumf %8, %10 : vector<8x1xf32>
    %c0_i32 = arith.constant 0 : i32
    %c10_i32 = arith.constant 10 : i32
    %12 = arith.addi %c0_i32, %c10_i32 : i32
    %c1_i32 = arith.constant 1 : i32
    %13 = scf.for %arg3 = %c0_i32 to %12 step %c1_i32 iter_args(%arg4 = %11) -> (vector<8x1xf32>)  : i32 {
      %c0_10 = arith.constant 0 : index
      %c0_11 = arith.constant 0 : index
      %21 = vector.load %arg1[%c0_10, %c0_11] : memref<8x32xf32, #tpu.memory_space<vmem>>, vector<8x32xf32>
      %22 = vector.broadcast %arg4 : vector<8x1xf32> to vector<8x32xf32>
      %23 = arith.cmpf ogt, %21, %22 : vector<8x32xf32>
      %24 = arith.extui %23 : vector<8x32xi1> to vector<8x32xi32>
      %25 = arith.sitofp %24 : vector<8x32xi32> to vector<8x32xf32>
      %cst_12 = arith.constant dense<0.000000e+00> : vector<8xf32>
      %26 = vector.multi_reduction <add>, %25, %cst_12 [1] : vector<8x32xf32> to vector<8xf32>
      %27 = vector.shape_cast %26 : vector<8xf32> to vector<8x1xf32>
      %cst_13 = arith.constant 0.000000e+00 : f32
      %28 = vector.broadcast %cst_13 : f32 to vector<8x32xf32>
      %29 = arith.select %23, %21, %28 : vector<8x32xi1>, vector<8x32xf32>
      %cst_14 = arith.constant dense<0.000000e+00> : vector<8xf32>
      %30 = vector.multi_reduction <add>, %29, %cst_14 [1] : vector<8x32xf32> to vector<8xf32>
      %31 = vector.shape_cast %30 : vector<8xf32> to vector<8x1xf32>
      %cst_15 = arith.constant 1.000000e+00 : f32
      %32 = vector.broadcast %cst_15 : f32 to vector<8x1xf32>
      %33 = arith.subf %31, %32 : vector<8x1xf32>
      %34 = arith.divf %33, %27 : vector<8x1xf32>
      scf.yield %34 : vector<8x1xf32>
    }
    %c0_5 = arith.constant 0 : index
    %c0_6 = arith.constant 0 : index
    %14 = vector.load %arg1[%c0_5, %c0_6] : memref<8x32xf32, #tpu.memory_space<vmem>>, vector<8x32xf32>
    %15 = vector.broadcast %13 : vector<8x1xf32> to vector<8x32xf32>
    %16 = arith.subf %14, %15 : vector<8x32xf32>
    %cst_7 = arith.constant 0.000000e+00 : f32
    %17 = vector.broadcast %cst_7 : f32 to vector<8x32xf32>
    %18 = arith.maximumf %16, %17 : vector<8x32xf32>
    %19 = math.log %18 : vector<8x32xf32>
    %c0_8 = arith.constant 0 : index
    %c0_9 = arith.constant 0 : index
    %20 = vector.load %arg2[%c0_8, %c0_9] : memref<8x32xf32, #tpu.memory_space<vmem>>, vector<8x32xf32>
    tpu.vector_store %arg2[%c0_8, %c0_9], %19 {strides = array<i32>} : memref<8x32xf32, #tpu.memory_space<vmem>>, vector<8x32xf32>,
    return
  }
  func.func @transform_0(%arg0: i32) -> (i32, i32) {
    %c0_i32 = arith.constant 0 : i32
    %c0_i32_0 = arith.constant 0 : i32
    return %arg0, %c0_i32 : i32, i32
  }
  func.func @transform_1(%arg0: i32) -> (i32, i32) {
    %c0_i32 = arith.constant 0 : i32
    %c0_i32_0 = arith.constant 0 : i32
    return %arg0, %c0_i32 : i32, i32
  }
}

</mosaic_0001>

<bundles_post_ra>
// kernel: tpu_custom_call.1
= control target key start
LH: loop header
LB: loop body
LE: loop exit
PB: predicated region body
PF: predicated region fallthrough
CT: control target
= control target key end

     0   :  { %6 = vsyncpa [#allocation3], 0  ;;  %s647_s0 = inlined_call_operand.hbm [shape: f32[16,32], index: 0, kind: input, shape index: {}]   ;;  %s648_s1 = inlined_call_operand.hbm [shape: f32[16,32], index: 1, kind: output, shape index: {}]  }
   0x1   :  { %8 = vsyncpa [#allocation3 + $0x1], 0 }
   0x2   :  { %9 = vsyncpa [#allocation4], 0 }
   0x3   :  { %11 = vsyncpa [#allocation4 + $0x1], 0  ;;  %s473_s6 = smov 0   ;;  %s475_s7 = smov 0  }
   0x4   :  { %s477_s8 = smov 0   ;;  %s479_s9 = smov 0  }
   0x5 LB: > { %s494_s10 = sadd.s32 4294967295, %s450_s9   ;;  %s263_s11 = sadd.s32 4294967294, %s450_s9   ;;  %s450_s9 = sphi %s479_s9, %s663_s9   ;;  %s446_s8 = sphi %s477_s8, %s662_s8   ;;  %s442_s7 = sphi %s475_s7, %s661_s7   ;;  %s438_s6 = sphi %s473_s6, %s660_s6  }
   0x6   : > { %s498_s12 = sadd.s32 1, %s450_s9   ;;  %s24_s13 = sadd.s32 1, %s446_s8 }
   0x7   : > { %s21_s14 = ssub.s32 %s450_s9, %s498_s12  ;;  %p31_p0 = scmp.ne.s32.totalorder %s446_s8, %s442_s7 }
   0x8   : > { %p22_p1 = scmp.eq.s32.totalorder %s21_s14, 0  ;;  %p32_p2 = scmp.eq.s32.totalorder %s450_s9, 0 }
   0x9   : > { %p37_p3 = scmp.ne.s32.totalorder %s442_s7, %s438_s6  ;;  %p38_p4 = scmp.eq.s32.totalorder %s494_s10, 0 }
   0xa   : > { %s510_s15 = scalar_select %p22_p1, %s446_s8, %s24_s13  }
   0xb   : > { %p512_p5 = por %p32_p2, %p31_p0  ;;  %p516_p6 = por %p38_p4, %p37_p3 }
   0xc   : > { %p61_p7 = scmp.eq.s32.totalorder %s494_s10, 1  ;;  %p67_p8 = scmp.eq.s32.totalorder %s263_s11, 1 }
   0xd   : > { %p291_p10 = scmp.lt.s32.totalorder %s450_s9, 2  ;;  %s87_s20 = sand.u32 1, %s446_s8  }
   0xe   : > { %p523_p11 = por %p61_p7, %p31_p0  ;;  %p527_p12 = por %p67_p8, %p37_p3 }
   0xf   : > { %s267_s21 = sshll.u32 %s450_s9, 7  ;;  %s266_s22 = sshll.u32 %s87_s20, 3 }
  0x10   : > { %s652_s18 = scalar_select %p523_p11, 1, 0 }
  0x11   : > { %s653_s19 = scalar_select %p527_p12, 1, 0 }
  0x12   : > { %s536_s25 = scalar_lea.hbm %s647_s0, %s267_s21  ;;  %s91_s26 = scalar_lea.vmem [#allocation2], %s266_s22 }
  0x13   : > { %s98_s27 = sshll.u32 %s91_s26, 4  ;;  %p540_p13 = pnand %p291_p10, %p512_p5  ;;  %s544_s27 = int_to_ptr.vmem [resolvable:$true] %s98_s27 }
  0x14   : > { %s88_s29 = scalar_lea.sflag [#allocation3], %s87_s20  ;;  %s346_s30 = scalar_lea.hbm %s536_s25, 128 }
  0x15   : > { %p347_p2 = scmp.ne.s32.totalorder %s536_s25, %s346_s30  ;;  %p348_p3 = pneg %p540_p13 }
  0x16   : > { %s351_s4 = scalar_lea.hbm %s647_s0, 256  ;;  %p352_p5 = scmp.lt.u32.totalorder %s536_s25, %s647_s0 }
  0x17   : > { %p349_p4 = pnand %p348_p3, %p347_p2  ;;  %p353_p8 = scmp.lt.u32.totalorder %s351_s4, %s346_s30 }
  0x18   : > { %p355_p9 = scmp.lt.u32.totalorder %s346_s30, %s536_s25 }
  0x19   : > { %p350_p7 = pneg %p349_p4  ;;  %p354_p10 = por %p353_p8, %p352_p5 }
  0x1b   : > { %p356_p0 = por %p355_p9, %p354_p10 }
  0x1d   : > { %p357_p1 = pnand %p356_p0, %p350_p7 }
  0x1f   : > { %360 = shalt.err (!%p357_p1)
}
  0x20   : > { %s361_s13 = scalar_lea.vmem %s544_s27, 128  ;;  %s460_s14 = smov [#allocation2]  }
  0x21   : > { %p362_p2 = scmp.ne.s32.totalorder %s544_s27, %s361_s13  ;;  %s366_s16 = sshll.u32 %s460_s14, 4  ;;  %s367_s16 = int_to_ptr.vmem [resolvable:$false] %s366_s16 }
  0x22   : > { %s368_s20 = scalar_lea.vmem %s367_s16, 256  ;;  %p369_p11 = scmp.lt.s32.totalorder %s544_s27, %s367_s16 }
  0x23   : > { %p364_p4 = pnand %p362_p2, %p348_p3  ;;  %p370_p5 = scmp.lt.s32.totalorder %s368_s20, %s361_s13 }
  0x25   : > { %p365_p12 = pneg %p364_p4  ;;  %p371_p8 = por %p370_p5, %p369_p11 }
  0x27   : > { %p372_p9 = pnand %p371_p8, %p365_p12 }
  0x29   : > { %375 = shalt.err (!%p372_p9)
}
  0x2a   : > { %286 = dma.hbm_to_vmem [thread:$0]  (!%p540_p13), %s536_s25, 128, %s544_s27, %s88_s29  }
  0x2b   : > { %p655_p0 = scmp.lt.s32.totalorder %s450_s9, 3  ;;  %p656_p1 = scmp.ge.s32.totalorder %s450_s9, 1 }
  0x2d   : > { %p104_p3 = pnand %p656_p1, %p655_p0 }
  0x2e   : > { %s578_s21 = sand.u32 (!%p104_p3), 1, %s442_s7  }
  0x2f   : > { %107 = sbr.rel (%p104_p3) target bundleno = 398 (0x18e), region = 24  ;;  %s269_s22 = sshll.u32 (!%p104_p3), %s578_s21, 3 }
  0x30   : > { %s110_s23 = scalar_lea.sflag (!%p104_p3), [#allocation3], %s578_s21  ;;  %s582_s24 = scalar_lea.vmem (!%p104_p3), [#allocation2], %s269_s22 }
  0x36   : > { %429 = dma.done.wait (%p516_p6), %s110_s23, 128  }
  0x37   : > { %431 = vsyncadd (%p516_p6), %s110_s23, 4294967168  ;;  %vm133_vm0 = vcmask 261120   ;;  %v132_v0 = vld [vmem:[%s582_s24] sm:$0xff]  ;;  %s591_s25 = scalar_lea.vmem [#allocation5], %s269_s22  ;;  %s456_s17 = smov 0  }
  0x38   : > { %v134_v1 = vsel %vm133_vm0, %v132_v0, 0.0  ;;  %v137_v2 = vsel %vm133_vm0, %v132_v0, -inf }
  0x39   : > { %135 = vadd.xlane.f32.xlu0 %v134_v1 }
  0x3d   : > { %138 = vmax.xlane.f32.xlu0 %v137_v2 }
  0xc6   : > { %v136_v3 = vpop.xlane.xlu0 %135 }
  0xc7   : > { %v271_v4 = vadd.f32 -1.0, %v136_v3 }
  0xc9   : > { %v142_v6 = vmul.f32 0.03125, %v271_v4 }
  0xca   : > { %v139_v5 = vpop.xlane.xlu0 %138 }
  0xcb   : > { %v272_v7 = vadd.f32 -1.0, %v139_v5 }
  0xcd   : > { %v144_v8 = vmax.f32 %v142_v6, %v272_v7  }
  0xcf   : > { %v452_v9 = vmov %v144_v8  }
  0xd0 LB: >> { %v152_v10 = vld [vmem:[%s582_s24] sm:$0xff]  ;;  %v461_v11 = vmov 0.0   ;;  %s150_s17 = sadd.s32 1, %s458_s17   ;;  %s458_s17 = sphi %s456_s17, %s150_s17   ;;  %v454_v9 = vphi %v452_v9, %v453_v9  }
  0xd1   : >> { %vm153_vm1 = vcmp.gt.f32.partialorder %v152_v10, %v454_v9  ;;  %p147_p6 = scmp.ge.s32.totalorder %s150_s17, 10  }
  0xd2   : >> { %v273_v12 = vsel %vm153_vm1, 1.0, %v461_v11  ;;  %v159_v13 = vsel %vm153_vm1, %v152_v10, 0.0  ;;  %s276_s26 = sshll.u32 (%p147_p6), %s494_s10, 7  ;;  %s185_s27 = sshll.u32 (%p147_p6), %s591_s25, 4  ;;  %s603_s27 = int_to_ptr.vmem [resolvable:$true] %s185_s27 }
  0xd3   : >> { %v156_v14 = vsel %vm133_vm0, %v273_v12, 0.0  ;;  %v160_v15 = vsel %vm133_vm0, %v159_v13, 0.0  ;;  %s601_s30 = scalar_lea.hbm (%p147_p6), %s648_s1, %s276_s26  ;;  %s172_s2 = scalar_lea.sflag (%p147_p6), [#allocation4], %s578_s21 }
  0xd4   : >> { %157 = vadd.xlane.f32.xlu0 %v156_v14  ;;  %s376_s3 = scalar_lea.vmem (%p147_p6), %s603_s27, 128  ;;  %p657_p12 = scmp.ne.s32.totalorder (%p147_p6), %s652_s18, 0 }
  0xd5   : > { %p377_p11 = scmp.ne.s32.totalorder (%p147_p6), %s603_s27, %s376_s3  ;;  %s462_s10 = smov (%p147_p6), [#allocation5]  }
  0xd6   : > { %s380_s4 = sshll.u32 (%p147_p6), %s462_s10, 4  ;;  %s381_s4 = int_to_ptr.vmem [resolvable:$false] %s380_s4 }
  0xd7   : > { %p378_p13 = pnand (%p147_p6), %p377_p11, %p657_p12  ;;  %s382_s5 = scalar_lea.vmem (%p147_p6), %s381_s4, 256 }
  0xd8   : >> { %161 = vadd.xlane.f32.xlu0 %v160_v15  ;;  %p383_p10 = scmp.lt.s32.totalorder (%p147_p6), %s603_s27, %s381_s4  ;;  %p384_p2 = scmp.lt.s32.totalorder (%p147_p6), %s382_s5, %s376_s3 }
  0xd9   : > { %p379_p7 = pneg (%p147_p6), %p378_p13 }
  0xda   : > { %p385_p4 = por (%p147_p6), %p384_p2, %p383_p10 }
  0xdc   : > { %p386_p5 = pnand (%p147_p6), %p385_p4, %p379_p7 }
 0x161   : >> { %v158_v16 = vpop.xlane.xlu0 %157 }
 0x162   : >> { %342 = vrcp.f32 %v158_v16 }
 0x165   : >> { %v162_v17 = vpop.xlane.xlu0 %161 }
 0x166   : >> { %v274_v18 = vadd.f32 -1.0, %v162_v17 }
 0x169   : > { %149 = sbr.rel (!%p147_p6) target bundleno = 208 (0xd0), region = 76 }
 0x16c   : >> { %v343_v19 = vpop.eup %342 }
 0x16d   : >> { %v165_v20 = vmul.f32 %v343_v19, %v274_v18  }
 0x16f   : >> { %v453_v9 = vmov %v165_v20   ;;  %v166_v21 = vsub.f32 (%p147_p6), %v132_v0, %v165_v20 }
 0x171   : > { %v167_v22 = vmax.f32 %v166_v21, 0.0 }
 0x173   : > { %344 = vlog2.f32 %v167_v22 }
 0x17d   : > { %v345_v23 = vpop.eup %344 }
 0x17e   : > { %v169_v24 = vmul.f32 0.6931472, %v345_v23 }
 0x180   : > { %170 = vst.msk [vmem:[%s591_s25] sm:$0xff] %vm133_vm0, %v169_v24 }
 0x181   : > { %389 = shalt.err (!%p386_p5)
}
 0x182   : > { %s390_s11 = scalar_lea.hbm %s601_s30, 128  ;;  %s394_s16 = scalar_lea.hbm %s648_s1, 256 }
 0x183   : > { %p391_p8 = scmp.ne.s32.totalorder %s601_s30, %s390_s11  ;;  %p395_p1 = scmp.lt.u32.totalorder %s601_s30, %s648_s1 }
 0x184   : > { %p396_p3 = scmp.lt.u32.totalorder %s394_s16, %s390_s11  ;;  %p398_p11 = scmp.lt.u32.totalorder %s390_s11, %s601_s30 }
 0x185   : > { %p392_p9 = pnand %p391_p8, %p657_p12 }
 0x186   : > { %p397_p6 = por %p396_p3, %p395_p1 }
 0x187   : > { %p393_p0 = pneg %p392_p9 }
 0x188   : > { %p399_p13 = por %p398_p11, %p397_p6 }
 0x18a   : > { %p400_p7 = pnand %p399_p13, %p393_p0 }
 0x18c   : > { %403 = shalt.err (!%p400_p7)
}
 0x18d   : > { %281 = dma.vmem_to_hbm [thread:$0]  (%p657_p12), %s603_s27, 128, %s601_s30, %s172_s2  }
 0x18e PF: > { %s197_s22 = sand.u32 1, %s438_s6   ;;  %p658_p10 = scmp.ne.s32.totalorder %s653_s19, 0 }
 0x18f   : > { %p659_p2 = scmp.ge.s32.totalorder %s450_s9, 2  ;;  %s198_s23 = scalar_lea.sflag [#allocation4], %s197_s22 }
 0x191   : > { %p288_p4 = pnand %p659_p2, %p658_p10 }
 0x193   : > { %433 = dma.done.wait (!%p288_p4), %s198_s23, 128  }
 0x194   : > { %435 = vsyncadd (!%p288_p4), %s198_s23, 4294967168  ;;  %p14_p5 = scmp.ge.s32.totalorder %s498_s12, 4   ;;  %s660_s6 = smov %s442_s7 }
 0x195   : > { %s661_s7 = smov %s446_s8  ;;  %s662_s8 = smov %s510_s15 }
 0x196   : > { %s663_s9 = smov %s498_s12  ;;  %16 = sbr.rel (!%p14_p5) target bundleno = 5 (0x5), region = 87 }
 0x19d   :  { %203 = vsyncpa [#allocation3], 1 }
 0x19e   :  { %205 = vsyncpa [#allocation3 + $0x1], 1 }
 0x19f   :  { %206 = vsyncpa [#allocation4], 1 }
 0x1a0   :  { %208 = vsyncpa [#allocation4 + $0x1], 1 }

</bundles_post_ra>
